<compile_context>
chip_gen: v5e
topology: v5e:2x2
jax: 0.10.0
libtpu: 0.0.40
codegen_flags: <defaults>
</compile_context>

<pallas_src>
import functools

import jax
import jax.numpy as jnp
from jax import lax
from jax.experimental import pallas as pl
from jax.experimental.pallas import tpu as pltpu


def _round_up(n, m):
    return ((n + m - 1) // m) * m


def _pad2(x, rows, cols):
    return jnp.pad(x, ((0, rows - x.shape[0]), (0, cols - x.shape[1])))


# ---------------------------------------------------------------------------
# Phase 2 kernel: chunked sequential LSTM recurrence.
#   grid = (n_chunks,)  ("arbitrary": h/c carried across chunks in VMEM outputs)
#   x_proj blocks (Tc, Bp, 4*Hp) are pipelined per chunk; W_hh, h0, c0 are
#   VMEM-resident (constant index maps). Emits h_t for every step.
# ---------------------------------------------------------------------------
def _lstm_recurrence_kernel(xproj_ref, whh_ref, h0_ref, c0_ref,
                            hall_ref, hout_ref, cout_ref, *, tc, t_total):
    chunk = pl.program_id(0)
    Hp = hout_ref.shape[-1]

    @pl.when(chunk == 0)
    def _():
        hout_ref[...] = h0_ref[...]
        cout_ref[...] = c0_ref[...]

    w_hh = whh_ref[...]                      # (Hp, 4*Hp), VMEM-resident
    needs_mask = (t_total % tc) != 0         # static: only mask the ragged tail

    def step(s, carry):
        h, c = carry
        # Only the hidden->gates matmul (K = Hp) sits on the serial chain.
        gates = xproj_ref[s] + jnp.dot(h, w_hh, preferred_element_type=jnp.float32)
        # PyTorch LSTM gate order [i, f, g, o]; Hp multiple of 128 -> lane-aligned.
        i_g = jax.nn.sigmoid(gates[:, 0 * Hp:1 * Hp])
        f_g = jax.nn.sigmoid(gates[:, 1 * Hp:2 * Hp])
        g_g = jnp.tanh(gates[:, 2 * Hp:3 * Hp])
        o_g = jax.nn.sigmoid(gates[:, 3 * Hp:4 * Hp])
        c_new = f_g * c + i_g * g_g
        h_new = o_g * jnp.tanh(c_new)
        if needs_mask:
            valid = (chunk * tc + s) < t_total
            h_new = jnp.where(valid, h_new, h)
            c_new = jnp.where(valid, c_new, c)
        hall_ref[s] = h_new
        return h_new, c_new

    h_fin, c_fin = lax.fori_loop(0, tc, step, (hout_ref[...], cout_ref[...]),
                                 unroll=True)
    hout_ref[...] = h_fin
    cout_ref[...] = c_fin


# ---------------------------------------------------------------------------
# Phase 3 kernel: vocab projection, parallel over (time-chunk, vocab-tile).
# ---------------------------------------------------------------------------
def _vocab_proj_kernel(h_ref, w_ref, b_ref, out_ref):
    out_ref[...] = (jnp.dot(h_ref[...], w_ref[...],
                            preferred_element_type=jnp.float32) + b_ref[...])


# ---------------------------------------------------------------------------
# Parameter packing (done once, outside the hot path).
# ---------------------------------------------------------------------------
def pack_params(params):
    emb = params["embedding"]         # (V, E)
    w_ih = params["w_ih"]             # (E, 4H)  == weight_ih_l0.T
    w_hh = params["w_hh"]             # (H, 4H)  == weight_hh_l0.T
    b = params["b"]                   # (1, 4H)  == b_ih + b_hh (folded once)
    w_out = params["w_out"]           # (H, O)   == out.weight.T
    b_out = params["b_out"]           # (1, O)

    V, _ = emb.shape
    H = w_hh.shape[0]
    O = w_out.shape[1]
    Hp, Op = _round_up(H, 128), _round_up(O, 128)

    def pad_gate_cols(w, rows_p):
        # (rows, 4H) -> (rows_p, 4*Hp): pad each of the 4 gate blocks separately
        rows = w.shape[0]
        w4 = w.reshape(rows, 4, H)
        w4 = jnp.pad(w4, ((0, rows_p - rows), (0, 0), (0, Hp - H)))
        return w4.reshape(rows_p, 4 * Hp)

    # Fold Embedding -> ReLU -> input projection -> fused bias into one table.
    xproj = jnp.maximum(emb, 0.0) @ w_ih + b            # (V, 4H)
    return {
        "xproj_table": pad_gate_cols(xproj, V),         # (V, 4*Hp) (pad cols are 0)
        "w_hh": pad_gate_cols(w_hh, Hp),                 # (Hp, 4*Hp)
        "w_out": _pad2(w_out, Hp, Op),                   # (Hp, Op)
        "b_out": _pad2(b_out, 1, Op),                    # (1, Op)
    }


# ---------------------------------------------------------------------------
# Fused multi-step decode.
# ---------------------------------------------------------------------------
@functools.partial(jax.jit, static_argnames=("out_dim",))
def decode_fused(tokens, h0, c0, packed, *, out_dim):
    """
    tokens: (T, B) int32 token ids (step-major)
    h0, c0: (B, H) float32 initial LSTM state
    returns: (logits (T, B, out_dim), h (B, H), c (B, H))
    """
    T, B = tokens.shape
    H = h0.shape[-1]
    G4 = packed["xproj_table"].shape[-1]
    Hp, Op = packed["w_out"].shape
    Bp = _round_up(B, 8)

    Tc = min(8, T)                       # decode steps per grid iteration
    n_chunks = pl.cdiv(T, Tc)
    Tp = n_chunks * Tc

    # --- Phase 1 (parallel, off the serial chain): per-step gate inputs --------
    tokens_p = jnp.pad(tokens.astype(jnp.int32), ((0, Tp - T), (0, Bp - B)))
    x_proj = jnp.take(packed["xproj_table"], tokens_p.reshape(-1), axis=0)
    x_proj = x_proj.reshape(Tp, Bp, G4)

    h0_p = _pad2(h0.astype(jnp.float32), Bp, Hp)
    c0_p = _pad2(c0.astype(jnp.float32), Bp, Hp)

    def const(shape):
        return pl.BlockSpec(shape, lambda ch, _s=len(shape): (0,) * _s)

    # --- Phase 2: sequential recurrence kernel ---------------------------------
    flops_rec = 2 * Tp * Bp * Hp * G4 + 12 * Tp * Bp * Hp
    trans_rec = 5 * Tp * Bp * Hp
    bytes_rec = 4 * (Tp * Bp * G4 + Hp * G4 + Tp * Bp * Hp + 4 * Bp * Hp)

    h_all, h_fin, c_fin = pl.pallas_call(
        functools.partial(_lstm_recurrence_kernel, tc=Tc, t_total=T),
        out_shape=(
            jax.ShapeDtypeStruct((Tp, Bp, Hp), jnp.float32),
            jax.ShapeDtypeStruct((Bp, Hp), jnp.float32),
            jax.ShapeDtypeStruct((Bp, Hp), jnp.float32),
        ),
        grid=(n_chunks,),
        in_specs=[
            pl.BlockSpec((Tc, Bp, G4), lambda ch: (ch, 0, 0)),   # x_proj (pipelined)
            const((Hp, G4)),                                     # W_hh (resident)
            const((Bp, Hp)),                                     # h0
            const((Bp, Hp)),                                     # c0
        ],
        out_specs=(
            pl.BlockSpec((Tc, Bp, Hp), lambda ch: (ch, 0, 0)),   # h_all
            const((Bp, Hp)),                                     # final h (carry)
            const((Bp, Hp)),                                     # final c (carry)
        ),
        compiler_params=pltpu.CompilerParams(
            dimension_semantics=("arbitrary",),
            vmem_limit_bytes=32 * 1024 * 1024),
        cost_estimate=pl.CostEstimate(flops=flops_rec, transcendentals=trans_rec,
                                      bytes_accessed=bytes_rec),
    )(x_proj, packed["w_hh"], h0_p, c0_p)

    # --- Phase 3: vocab projection, parallel over (time-chunk, vocab-tile) -----
    Tn = min(Op, 512)
    if Op % Tn:
        Tn = 128
    n_vtiles = Op // Tn
    rows = Tp * Bp
    row_tile = Tc * Bp
    h2d = h_all.reshape(rows, Hp)

    flops_proj = 2 * rows * Hp * Op
    bytes_proj = 4 * (rows * Hp + Hp * Op + rows * Op + Op)

    logits2d = pl.pallas_call(
        _vocab_proj_kernel,
        out_shape=jax.ShapeDtypeStruct((rows, Op), jnp.float32),
        grid=(n_chunks, n_vtiles),
        in_specs=[
            pl.BlockSpec((row_tile, Hp), lambda ti, vi: (ti, 0)),
            pl.BlockSpec((Hp, Tn), lambda ti, vi: (0, vi)),
            pl.BlockSpec((1, Tn), lambda ti, vi: (0, vi)),
        ],
        out_specs=pl.BlockSpec((row_tile, Tn), lambda ti, vi: (ti, vi)),
        compiler_params=pltpu.CompilerParams(
            dimension_semantics=("parallel", "parallel"),
            vmem_limit_bytes=32 * 1024 * 1024),
        cost_estimate=pl.CostEstimate(flops=flops_proj, transcendentals=0,
                                      bytes_accessed=bytes_proj),
    )(h2d, packed["w_out"], packed["b_out"])

    logits = logits2d.reshape(Tp, Bp, Op)
    return logits[:T, :B, :out_dim], h_fin[:B, :H], c_fin[:B, :H]


def decoder_forward(inputs, prev_hidden, prev_cell, packed, *, out_dim):
    """
    Exactly the PyTorch Decoder.forward (single decode step):
      inputs:      (B,)      int32 token ids (the module unsqueezes to (B, 1))
      prev_hidden: (1, B, H) float32
      prev_cell:   (1, B, H) float32
    Returns (logits (B, out_dim), hidden (1, B, H), cell (1, B, H)).
    """
    logits, h, c = decode_fused(inputs[None, :], prev_hidden[0], prev_cell[0],
                                packed, out_dim=out_dim)
    return logits[0], h[None], c[None]


# ---------------------------------------------------------------------------
# Pure-JAX reference mirroring the PyTorch module (unpadded parameters).
# ---------------------------------------------------------------------------
def _reference_forward(inputs, prev_hidden, prev_cell, params):
    emb = jnp.take(params["embedding"], inputs, axis=0)
    x = jnp.maximum(emb, 0.0)
    h = prev_hidden[0]
    c = prev_cell[0]
    H = h.shape[-1]
    gates = x @ params["w_ih"] + h @ params["w_hh"] + params["b"]
    i_g = jax.nn.sigmoid(gates[:, 0 * H:1 * H])
    f_g = jax.nn.sigmoid(gates[:, 1 * H:2 * H])
    g_g = jnp.tanh(gates[:, 2 * H:3 * H])
    o_g = jax.nn.sigmoid(gates[:, 3 * H:4 * H])
    c_new = f_g * c + i_g * g_g
    h_new = o_g * jnp.tanh(c_new)
    logits = h_new @ params["w_out"] + params["b_out"]
    return logits, h_new[None], c_new[None]


def init_params(key, output_dim, emb_dim, hidn_dim):
    ks = jax.random.split(key, 7)
    scale = 0.1
    return {
        "embedding": scale * jax.random.normal(ks[0], (output_dim, emb_dim), jnp.float32),
        # PyTorch LSTM weights are (4H, E)/(4H, H); stored transposed here.
        "w_ih": scale * jax.random.normal(ks[1], (emb_dim, 4 * hidn_dim), jnp.float32),
        "w_hh": scale * jax.random.normal(ks[2], (hidn_dim, 4 * hidn_dim), jnp.float32),
        # combined b_ih + b_hh
        "b": (scale * jax.random.normal(ks[3], (1, 4 * hidn_dim), jnp.float32)
              + scale * jax.random.normal(ks[4], (1, 4 * hidn_dim), jnp.float32)),
        "w_out": scale * jax.random.normal(ks[5], (hidn_dim, output_dim), jnp.float32),
        "b_out": scale * jax.random.normal(ks[6], (1, output_dim), jnp.float32),
    }


if __name__ == "__main__":
    batch = 4
    output_dim = 32   # vocab size
    emb_dim = 16
    hidn_dim = 32
    steps = 6

    key = jax.random.PRNGKey(0)
    k_in, k_h, k_c, k_p, k_seq, k_seq2 = jax.random.split(key, 6)

    inputs = jax.random.randint(k_in, (batch,), 0, output_dim, dtype=jnp.int32)
    prev_hidden = jax.random.normal(k_h, (1, batch, hidn_dim), jnp.float32)
    prev_cell = jax.random.normal(k_c, (1, batch, hidn_dim), jnp.float32)
    params = init_params(k_p, output_dim, emb_dim, hidn_dim)
    packed = pack_params(params)

    # --- single step: exactly the module's forward -------------------------
    logits, hidden, cell = decoder_forward(inputs, prev_hidden, prev_cell,
                                           packed, out_dim=output_dim)
    jax.block_until_ready((logits, hidden, cell))

    ref_logits, ref_hidden, ref_cell = _reference_forward(
        inputs, prev_hidden, prev_cell, params)
    assert logits.shape == (batch, output_dim)
    assert hidden.shape == (1, batch, hidn_dim)
    assert cell.shape == (1, batch, hidn_dim)
    assert jnp.allclose(logits, ref_logits, atol=1e-5, rtol=1e-5)
    assert jnp.allclose(hidden, ref_hidden, atol=1e-5, rtol=1e-5)
    assert jnp.allclose(cell, ref_cell, atol=1e-5, rtol=1e-5)

    # --- fused multi-step decode (single chunk) -----------------------------
    tokens = jax.random.randint(k_seq, (steps, batch), 0, output_dim, dtype=jnp.int32)
    seq_logits, h_fin, c_fin = decode_fused(tokens, prev_hidden[0], prev_cell[0],
                                            packed, out_dim=output_dim)
    jax.block_until_ready((seq_logits, h_fin, c_fin))

    h, c = prev_hidden, prev_cell
    ref_seq = []
    for t in range(steps):
        lg, h, c = _reference_forward(tokens[t], h, c, params)
        ref_seq.append(lg)
    ref_seq = jnp.stack(ref_seq, axis=0)
    assert jnp.allclose(seq_logits, ref_seq, atol=1e-4, rtol=1e-4)
    assert jnp.allclose(h_fin, h[0], atol=1e-4, rtol=1e-4)
    assert jnp.allclose(c_fin, c[0], atol=1e-4, rtol=1e-4)

    # --- multi-chunk + ragged tail (tests chunking / step masking) ----------
    steps2 = 11
    tokens2 = jax.random.randint(k_seq2, (steps2, batch), 0, output_dim,
                                 dtype=jnp.int32)
    seq_logits2, h_fin2, c_fin2 = decode_fused(tokens2, prev_hidden[0], prev_cell[0],
                                               packed, out_dim=output_dim)
    jax.block_until_ready((seq_logits2, h_fin2, c_fin2))

    h, c = prev_hidden, prev_cell
    ref_seq2 = []
    for t in range(steps2):
        lg, h, c = _reference_forward(tokens2[t], h, c, params)
        ref_seq2.append(lg)
    ref_seq2 = jnp.stack(ref_seq2, axis=0)
    assert jnp.allclose(seq_logits2, ref_seq2, atol=1e-4, rtol=1e-4)
    assert jnp.allclose(h_fin2, h[0], atol=1e-4, rtol=1e-4)
    assert jnp.allclose(c_fin2, c[0], atol=1e-4, rtol=1e-4)

    print("KERNEL_OK")
</pallas_src>

<mosaic_0001>
module attributes {stable_mosaic.version = 11 : i64} {
  func.func @_vocab_proj_kernel(%arg0: i32, %arg1: i32, %arg2: memref<8x128xf32, #tpu.memory_space<vmem>>, %arg3: memref<128x128xf32, #tpu.memory_space<vmem>>, %arg4: memref<1x128xf32, #tpu.memory_space<vmem>>, %arg5: memref<8x128xf32, #tpu.memory_space<vmem>>) attributes {dimension_semantics = [#tpu.dimension_semantics<parallel>, #tpu.dimension_semantics<parallel>], iteration_bounds = array<i64: 1, 1>, scalar_prefetch = 0 : i64, scratch_operands = 0 : i64, tpu.core_type = #tpu.core_type<tc>, window_params = [{transform_indices = @transform_0, window_bounds = array<i64: 8, 128>}, {transform_indices = @transform_1, window_bounds = array<i64: 128, 128>}, {transform_indices = @transform_2, window_bounds = array<i64: 1, 128>}, {transform_indices = @transform_3, window_bounds = array<i64: 8, 128>}]} {
    %c0 = arith.constant 0 : index
    %c0_0 = arith.constant 0 : index
    %0 = vector.load %arg2[%c0, %c0_0] : memref<8x128xf32, #tpu.memory_space<vmem>>, vector<8x128xf32>
    %c0_1 = arith.constant 0 : index
    %c0_2 = arith.constant 0 : index
    %1 = vector.load %arg3[%c0_1, %c0_2] : memref<128x128xf32, #tpu.memory_space<vmem>>, vector<128x128xf32>
    %cst = arith.constant dense<0.000000e+00> : vector<8x128xf32>
    %2 = tpu.matmul %0, %1, %cst {dimension_numbers = #tpu.dot_dimension_numbers<[1], [0], [0], [1], [0, 0, 1, 1], [], []>} : vector<8x128xf32>, vector<128x128xf32>, vector<8x128xf32> -> vector<8x128xf32>
    %c0_3 = arith.constant 0 : index
    %c0_4 = arith.constant 0 : index
    %3 = vector.load %arg4[%c0_3, %c0_4] : memref<1x128xf32, #tpu.memory_space<vmem>>, vector<1x128xf32>
    %4 = vector.broadcast %3 : vector<1x128xf32> to vector<8x128xf32>
    %5 = arith.addf %2, %4 : vector<8x128xf32>
    %c0_5 = arith.constant 0 : index
    %c0_6 = arith.constant 0 : index
    %6 = vector.load %arg5[%c0_5, %c0_6] : memref<8x128xf32, #tpu.memory_space<vmem>>, vector<8x128xf32>
    tpu.vector_store %arg5[%c0_5, %c0_6], %5 {strides = array<i32>} : memref<8x128xf32, #tpu.memory_space<vmem>>, vector<8x128xf32>,
    return
  }
  func.func @transform_0(%arg0: i32, %arg1: i32) -> (i32, i32) {
    %c0_i32 = arith.constant 0 : i32
    %c0_i32_0 = arith.constant 0 : i32
    return %arg0, %c0_i32 : i32, i32
  }
  func.func @transform_1(%arg0: i32, %arg1: i32) -> (i32, i32) {
    %c0_i32 = arith.constant 0 : i32
    %c0_i32_0 = arith.constant 0 : i32
    return %c0_i32, %arg1 : i32, i32
  }
  func.func @transform_2(%arg0: i32, %arg1: i32) -> (i32, i32) {
    %c0_i32 = arith.constant 0 : i32
    %c0_i32_0 = arith.constant 0 : i32
    return %c0_i32, %arg1 : i32, i32
  }
  func.func @transform_3(%arg0: i32, %arg1: i32) -> (i32, i32) {
    %c0_i32 = arith.constant 0 : i32
    return %arg0, %arg1 : i32, i32
  }
}

module attributes {stable_mosaic.version = 11 : i64} {
  func.func @_lstm_recurrence_kernel(%arg0: i32, %arg1: memref<1x8x512xf32, #tpu.memory_space<vmem>>, %arg2: memref<128x512xf32, #tpu.memory_space<vmem>>, %arg3: memref<8x128xf32, #tpu.memory_space<vmem>>, %arg4: memref<8x128xf32, #tpu.memory_space<vmem>>, %arg5: memref<1x8x128xf32, #tpu.memory_space<vmem>>, %arg6: memref<8x128xf32, #tpu.memory_space<vmem>>, %arg7: memref<8x128xf32, #tpu.memory_space<vmem>>) attributes {dimension_semantics = [#tpu.dimension_semantics<arbitrary>], iteration_bounds = array<i64: 1>, scalar_prefetch = 0 : i64, scratch_operands = 0 : i64, tpu.core_type = #tpu.core_type<tc>, window_params = [{transform_indices = @transform_0, window_bounds = array<i64: 1, 8, 512>}, {pipeline_mode = #tpu.pipeline_mode<synchronous>, transform_indices = @transform_1, window_bounds = array<i64: 128, 512>}, {pipeline_mode = #tpu.pipeline_mode<synchronous>, transform_indices = @transform_2, window_bounds = array<i64: 8, 128>}, {pipeline_mode = #tpu.pipeline_mode<synchronous>, transform_indices = @transform_3, window_bounds = array<i64: 8, 128>}, {transform_indices = @transform_4, window_bounds = array<i64: 1, 8, 128>}, {pipeline_mode = #tpu.pipeline_mode<synchronous>, transform_indices = @transform_5, window_bounds = array<i64: 8, 128>}, {pipeline_mode = #tpu.pipeline_mode<synchronous>, transform_indices = @transform_6, window_bounds = array<i64: 8, 128>}]} {
    %c0_i32 = arith.constant 0 : i32
    %0 = arith.cmpi eq, %arg0, %c0_i32 : i32
    %1 = arith.extui %0 : i1 to i32
    %c0_i32_0 = arith.constant 0 : i32
    %2 = arith.cmpi ne, %1, %c0_i32_0 : i32
    scf.if %2 {
      %c0_18 = arith.constant 0 : index
      %c0_19 = arith.constant 0 : index
      %42 = vector.load %arg3[%c0_18, %c0_19] : memref<8x128xf32, #tpu.memory_space<vmem>>, vector<8x128xf32>
      %c0_20 = arith.constant 0 : index
      %c0_21 = arith.constant 0 : index
      %43 = vector.load %arg6[%c0_20, %c0_21] : memref<8x128xf32, #tpu.memory_space<vmem>>, vector<8x128xf32>
      tpu.vector_store %arg6[%c0_20, %c0_21], %42 {strides = array<i32>} : memref<8x128xf32, #tpu.memory_space<vmem>>, vector<8x128xf32>,
      %c0_22 = arith.constant 0 : index
      %c0_23 = arith.constant 0 : index
      %44 = vector.load %arg4[%c0_22, %c0_23] : memref<8x128xf32, #tpu.memory_space<vmem>>, vector<8x128xf32>
      %c0_24 = arith.constant 0 : index
      %c0_25 = arith.constant 0 : index
      %45 = vector.load %arg7[%c0_24, %c0_25] : memref<8x128xf32, #tpu.memory_space<vmem>>, vector<8x128xf32>
      tpu.vector_store %arg7[%c0_24, %c0_25], %44 {strides = array<i32>} : memref<8x128xf32, #tpu.memory_space<vmem>>, vector<8x128xf32>,
    } else {
    }
    %c0 = arith.constant 0 : index
    %c0_1 = arith.constant 0 : index
    %3 = vector.load %arg2[%c0, %c0_1] : memref<128x512xf32, #tpu.memory_space<vmem>>, vector<128x512xf32>
    %c0_2 = arith.constant 0 : index
    %c0_3 = arith.constant 0 : index
    %4 = vector.load %arg6[%c0_2, %c0_3] : memref<8x128xf32, #tpu.memory_space<vmem>>, vector<8x128xf32>
    %c0_4 = arith.constant 0 : index
    %c0_5 = arith.constant 0 : index
    %5 = vector.load %arg7[%c0_4, %c0_5] : memref<8x128xf32, #tpu.memory_space<vmem>>, vector<8x128xf32>
    %c0_i32_6 = arith.constant 0 : i32
    %6 = arith.index_cast %c0_i32_6 : i32 to index
    %c0_7 = arith.constant 0 : index
    %c0_8 = arith.constant 0 : index
    %7 = vector.load %arg1[%6, %c0_7, %c0_8] : memref<1x8x512xf32, #tpu.memory_space<vmem>>, vector<1x8x512xf32>
    %8 = vector.shape_cast %7 : vector<1x8x512xf32> to vector<8x512xf32>
    %cst = arith.constant dense<0.000000e+00> : vector<8x512xf32>
    %9 = tpu.matmul %4, %3, %cst {dimension_numbers = #tpu.dot_dimension_numbers<[1], [0], [0], [1], [0, 0, 1, 1], [], []>} : vector<8x128xf32>, vector<128x512xf32>, vector<8x512xf32> -> vector<8x512xf32>
    %10 = arith.addf %8, %9 : vector<8x512xf32>
    %11 = vector.extract_strided_slice %10 {offsets = [0, 0], sizes = [8, 128], strides = [1, 1]} : vector<8x512xf32> to vector<8x128xf32>
    %12 = arith.negf %11 : vector<8x128xf32>
    %13 = math.exp %12 : vector<8x128xf32>
    %cst_9 = arith.constant 1.000000e+00 : f32
    %14 = vector.broadcast %cst_9 : f32 to vector<8x128xf32>
    %15 = arith.addf %14, %13 : vector<8x128xf32>
    %16 = arith.divf %14, %15 : vector<8x128xf32>
    %17 = vector.extract_strided_slice %10 {offsets = [0, 128], sizes = [8, 128], strides = [1, 1]} : vector<8x512xf32> to vector<8x128xf32>
    %18 = arith.negf %17 : vector<8x128xf32>
    %19 = math.exp %18 : vector<8x128xf32>
    %cst_10 = arith.constant 1.000000e+00 : f32
    %20 = vector.broadcast %cst_10 : f32 to vector<8x128xf32>
    %21 = arith.addf %20, %19 : vector<8x128xf32>
    %22 = arith.divf %20, %21 : vector<8x128xf32>
    %23 = vector.extract_strided_slice %10 {offsets = [0, 256], sizes = [8, 128], strides = [1, 1]} : vector<8x512xf32> to vector<8x128xf32>
    %24 = math.tanh %23 : vector<8x128xf32>
    %25 = vector.extract_strided_slice %10 {offsets = [0, 384], sizes = [8, 128], strides = [1, 1]} : vector<8x512xf32> to vector<8x128xf32>
    %26 = arith.negf %25 : vector<8x128xf32>
    %27 = math.exp %26 : vector<8x128xf32>
    %cst_11 = arith.constant 1.000000e+00 : f32
    %28 = vector.broadcast %cst_11 : f32 to vector<8x128xf32>
    %29 = arith.addf %28, %27 : vector<8x128xf32>
    %30 = arith.divf %28, %29 : vector<8x128xf32>
    %31 = arith.mulf %22, %5 : vector<8x128xf32>
    %32 = arith.mulf %16, %24 : vector<8x128xf32>
    %33 = arith.addf %31, %32 : vector<8x128xf32>
    %34 = math.tanh %33 : vector<8x128xf32>
    %35 = arith.mulf %30, %34 : vector<8x128xf32>
    %36 = arith.index_cast %c0_i32_6 : i32 to index
    %c0_12 = arith.constant 0 : index
    %c0_13 = arith.constant 0 : index
    %37 = vector.load %arg5[%36, %c0_12, %c0_13] : memref<1x8x128xf32, #tpu.memory_space<vmem>>, vector<1x8x128xf32>
    %38 = vector.shape_cast %37 : vector<1x8x128xf32> to vector<8x128xf32>
    %39 = vector.shape_cast %35 : vector<8x128xf32> to vector<1x8x128xf32>
    tpu.vector_store %arg5[%36, %c0_12, %c0_13], %39 {strides = array<i32>} : memref<1x8x128xf32, #tpu.memory_space<vmem>>, vector<1x8x128xf32>,
    %c1_i32 = arith.constant 1 : i32
    %c0_14 = arith.constant 0 : index
    %c0_15 = arith.constant 0 : index
    %40 = vector.load %arg6[%c0_14, %c0_15] : memref<8x128xf32, #tpu.memory_space<vmem>>, vector<8x128xf32>
    tpu.vector_store %arg6[%c0_14, %c0_15], %35 {strides = array<i32>} : memref<8x128xf32, #tpu.memory_space<vmem>>, vector<8x128xf32>,
    %c0_16 = arith.constant 0 : index
    %c0_17 = arith.constant 0 : index
    %41 = vector.load %arg7[%c0_16, %c0_17] : memref<8x128xf32, #tpu.memory_space<vmem>>, vector<8x128xf32>
    tpu.vector_store %arg7[%c0_16, %c0_17], %33 {strides = array<i32>} : memref<8x128xf32, #tpu.memory_space<vmem>>, vector<8x128xf32>,
    return
  }
  func.func @transform_0(%arg0: i32) -> (i32, i32, i32) {
    %c0_i32 = arith.constant 0 : i32
    %c0_i32_0 = arith.constant 0 : i32
    %c0_i32_1 = arith.constant 0 : i32
    return %arg0, %c0_i32, %c0_i32_0 : i32, i32, i32
  }
  func.func @transform_1(%arg0: i32) -> (i32, i32) {
    %c0_i32 = arith.constant 0 : i32
    %c0_i32_0 = arith.constant 0 : i32
    %c0_i32_1 = arith.constant 0 : i32
    return %c0_i32, %c0_i32_0 : i32, i32
  }
  func.func @transform_2(%arg0: i32) -> (i32, i32) {
    %c0_i32 = arith.constant 0 : i32
    %c0_i32_0 = arith.constant 0 : i32
    %c0_i32_1 = arith.constant 0 : i32
    return %c0_i32, %c0_i32_0 : i32, i32
  }
  func.func @transform_3(%arg0: i32) -> (i32, i32) {
    %c0_i32 = arith.constant 0 : i32
    %c0_i32_0 = arith.constant 0 : i32
    %c0_i32_1 = arith.constant 0 : i32
    return %c0_i32, %c0_i32_0 : i32, i32
  }
  func.func @transform_4(%arg0: i32) -> (i32, i32, i32) {
    %c0_i32 = arith.constant 0 : i32
    %c0_i32_0 = arith.constant 0 : i32
    %c0_i32_1 = arith.constant 0 : i32
    return %arg0, %c0_i32, %c0_i32_0 : i32, i32, i32
  }
  func.func @transform_5(%arg0: i32) -> (i32, i32) {
    %c0_i32 = arith.constant 0 : i32
    %c0_i32_0 = arith.constant 0 : i32
    %c0_i32_1 = arith.constant 0 : i32
    return %c0_i32, %c0_i32_0 : i32, i32
  }
  func.func @transform_6(%arg0: i32) -> (i32, i32) {
    %c0_i32 = arith.constant 0 : i32
    %c0_i32_0 = arith.constant 0 : i32
    %c0_i32_1 = arith.constant 0 : i32
    return %c0_i32, %c0_i32_0 : i32, i32
  }
}

</mosaic_0001>

<bundles_post_ra>
// kernel: decode_fused.3
= control target key start
LH: loop header
LB: loop body
LE: loop exit
PB: predicated region body
PF: predicated region fallthrough
CT: control target
= control target key end

     0   :  { %s138_s1 = inlined_call_operand.vmem [shape: f32[128,128], index: 1, kind: input, shape index: {}]   ;;  %s139_s2 = inlined_call_operand.vmem [shape: f32[1,128], index: 2, kind: input, shape index: {}]   ;;  %s140_s0 = inlined_call_operand.vmem [shape: f32[8,128], index: 0, kind: input, shape index: {}]   ;;  %s141_s3 = inlined_call_operand.vmem [shape: f32[8,128], index: 3, kind: output, shape index: {}]  }
   0x1   :  { %v30_v0 = vld [vmem:[%s138_s1 + $0x78] sm:$0xff]  ;;  %v29_v1 = vld [vmem:[%s138_s1 + $0x70] sm:$0xff]  ;;  %v28_v2 = vld [vmem:[%s138_s1 + $0x68] sm:$0xff] }
   0x2   :  { %35 = vmatpush.msra.mxu0 %v30_v0  ;;  %v27_v3 = vld [vmem:[%s138_s1 + $0x60] sm:$0xff]  ;;  %v26_v4 = vld [vmem:[%s138_s1 + $0x58] sm:$0xff]  ;;  %v25_v5 = vld [vmem:[%s138_s1 + $0x50] sm:$0xff] }
   0x3   :  { %v24_v6 = vld [vmem:[%s138_s1 + $0x48] sm:$0xff]  ;;  %v23_v7 = vld [vmem:[%s138_s1 + $0x40] sm:$0xff]  ;;  %v22_v8 = vld [vmem:[%s138_s1 + $0x38] sm:$0xff] }
   0x4   :  { %36 = vmatpush.msra.mxu0 %v29_v1  ;;  %v21_v9 = vld [vmem:[%s138_s1 + $0x30] sm:$0xff]  ;;  %v20_v10 = vld [vmem:[%s138_s1 + $0x28] sm:$0xff]  ;;  %v19_v11 = vld [vmem:[%s138_s1 + $0x20] sm:$0xff] }
   0x5   :  { %v18_v12 = vld [vmem:[%s138_s1 + $0x18] sm:$0xff]  ;;  %v17_v13 = vld [vmem:[%s138_s1 + $0x10] sm:$0xff]  ;;  %v16_v14 = vld [vmem:[%s138_s1 + $0x8] sm:$0xff] }
   0x6   :  { %37 = vmatpush.msra.mxu0 %v28_v2  ;;  %v15_v15 = vld [vmem:[%s138_s1] sm:$0xff] }
   0x7   :  { %v14_v16 = vld [vmem:[%s140_s0] sm:$0xff] }
   0x8   :  { %38 = vmatpush.msra.mxu0 %v27_v3  ;;  %v60_v17 = vld [vmem:[%s139_s2] ss:$0 sm:$0xff] }
   0xa   :  { %39 = vmatpush.msra.mxu0 %v26_v4 }
   0xc   :  { %40 = vmatpush.msra.mxu0 %v25_v5 }
   0xe   :  { %41 = vmatpush.msra.mxu0 %v24_v6 }
  0x10   :  { %42 = vmatpush.msra.mxu0 %v23_v7 }
  0x12   :  { %43 = vmatpush.msra.mxu0 %v22_v8 }
  0x14   :  { %44 = vmatpush.msra.mxu0 %v21_v9 }
  0x16   :  { %45 = vmatpush.msra.mxu0 %v20_v10 }
  0x18   :  { %46 = vmatpush.msra.mxu0 %v19_v11 }
  0x1a   :  { %47 = vmatpush.msra.mxu0 %v18_v12 }
  0x1c   :  { %48 = vmatpush.msra.mxu0 %v17_v13 }
  0x1e   :  { %49 = vmatpush.msra.mxu0 %v16_v14 }
  0x20   :  { %50 = vmatpush.msra.mxu0 %v15_v15 }
  0x21   :  { %51 = vmatmul.f32.vlgmr.msra.gmra.mxu0 %v14_v16 }
  0x9e   :  { %v52_v18 = vpop.f32.mrf.mxu0 }
  0x9f   :  { %v53_v19 = vadd.f32 %v60_v17, %v52_v18 }
  0xa1   :  { %55 = vst [vmem:[%s141_s3] sm:$0xff] %v53_v19 }

// kernel: decode_fused.2
= control target key start
LH: loop header
LB: loop body
LE: loop exit
PB: predicated region body
PF: predicated region fallthrough
CT: control target
= control target key end

     0   :  { %12 = vsyncpa [#allocation3], 0  ;;  %s325_s24 = smov [#allocation2]   ;;  %s326_s26 = smov 512   ;;  %s393_s0 = inlined_call_operand.vmem [shape: f32[1,8,512], index: 0, kind: input, shape index: {}]   ;;  %s394_s1 = inlined_call_operand.hbm [shape: f32[128,512], index: 1, kind: input, shape index: {}]   ;;  %s395_s2 = inlined_call_operand.vmem [shape: f32[8,128], index: 2, kind: input, shape index: {}]   ;;  %s396_s3 = inlined_call_operand.vmem [shape: f32[8,128], index: 3, kind: input, shape index: {}]   ;;  %s397_s4 = inlined_call_operand.vmem [shape: f32[1,8,128], index: 4, kind: output, shape index: {0}]   ;;  %s398_s5 = inlined_call_operand.vmem [shape: f32[8,128], index: 5, kind: output, shape index: {1}]   ;;  %s399_s6 = inlined_call_operand.vmem [shape: f32[8,128], index: 6, kind: output, shape index: {2}]  }
   0x1   :  { %s19_s23 = sshll.u32 %s394_s1, 4  ;;  %s21_s25 = sshll.u32 %s325_s24, 4  ;;  %s20_s23 = int_to_ptr.hbm [resolvable:$true] %s19_s23  ;;  %s22_s25 = int_to_ptr.vmem [resolvable:$true] %s21_s25 }
   0x2   :  { %s327_s27 = smov 32  }
   0x3   :  { %27 = dma.hbm_to_vmem [thread:$0]  %s20_s23, 8192, %s22_s25, [#allocation3], %s326_s26, %s326_s26, %s327_s27  }
   0x4   :  { %323 = dma.done.wait [#allocation3], 8192  }
   0x5   :  { %324 = vsyncadd [#allocation3], 4294959104  ;;  %v104_v0 = vld [vmem:[#allocation2 + $0x1e0] sm:$0xff]  ;;  %v105_v1 = vld [vmem:[#allocation2 + $0x1e8] sm:$0xff] }
   0x6   :  { %v107_v2 = vld [vmem:[#allocation2 + $0x1f8] sm:$0xff]  ;;  %114 = vmatpush.msra.mxu0 %v104_v0  ;;  %134 = vmatpush.msra.mxu1 %v105_v1  ;;  %v100_v3 = vld [vmem:[#allocation2 + $0x1c0] sm:$0xff]  ;;  %v101_v4 = vld [vmem:[#allocation2 + $0x1c8] sm:$0xff] }
   0x7   :  { %v103_v5 = vld [vmem:[#allocation2 + $0x1d8] sm:$0xff]  ;;  %174 = vmatpush.msra.mxu3 %v107_v2  ;;  %v96_v6 = vld [vmem:[#allocation2 + $0x1a0] sm:$0xff]  ;;  %v97_v7 = vld [vmem:[#allocation2 + $0x1a8] sm:$0xff] }
   0x8   :  { %115 = vmatpush.msra.mxu0 %v100_v3  ;;  %135 = vmatpush.msra.mxu1 %v101_v4  ;;  %v99_v8 = vld [vmem:[#allocation2 + $0x1b8] sm:$0xff]  ;;  %v92_v9 = vld [vmem:[#allocation2 + $0x180] sm:$0xff]  ;;  %v93_v10 = vld [vmem:[#allocation2 + $0x188] sm:$0xff] }
   0x9   :  { %175 = vmatpush.msra.mxu3 %v103_v5  ;;  %v95_v11 = vld [vmem:[#allocation2 + $0x198] sm:$0xff]  ;;  %v88_v12 = vld [vmem:[#allocation2 + $0x160] sm:$0xff]  ;;  %v89_v13 = vld [vmem:[#allocation2 + $0x168] sm:$0xff] }
   0xa   :  { %116 = vmatpush.msra.mxu0 %v96_v6  ;;  %136 = vmatpush.msra.mxu1 %v97_v7  ;;  %v91_v14 = vld [vmem:[#allocation2 + $0x178] sm:$0xff]  ;;  %v84_v15 = vld [vmem:[#allocation2 + $0x140] sm:$0xff]  ;;  %v85_v16 = vld [vmem:[#allocation2 + $0x148] sm:$0xff] }
   0xb   :  { %176 = vmatpush.msra.mxu3 %v99_v8  ;;  %v106_v17 = vld [vmem:[#allocation2 + $0x1f0] sm:$0xff]  ;;  %v87_v18 = vld [vmem:[#allocation2 + $0x158] sm:$0xff]  ;;  %v80_v20 = vld [vmem:[#allocation2 + $0x120] sm:$0xff] }
   0xc   :  { %117 = vmatpush.msra.mxu0 %v92_v9  ;;  %137 = vmatpush.msra.mxu1 %v93_v10  ;;  %v102_v19 = vld [vmem:[#allocation2 + $0x1d0] sm:$0xff]  ;;  %v81_v21 = vld [vmem:[#allocation2 + $0x128] sm:$0xff]  ;;  %v83_v22 = vld [vmem:[#allocation2 + $0x138] sm:$0xff] }
   0xd   :  { %177 = vmatpush.msra.mxu3 %v95_v11  ;;  %154 = vmatpush.msra.mxu2 %v106_v17  ;;  %v98_v23 = vld [vmem:[#allocation2 + $0x1b0] sm:$0xff]  ;;  %v76_v24 = vld [vmem:[#allocation2 + $0x100] sm:$0xff]  ;;  %v77_v25 = vld [vmem:[#allocation2 + $0x108] sm:$0xff] }
   0xe   :  { %118 = vmatpush.msra.mxu0 %v88_v12  ;;  %138 = vmatpush.msra.mxu1 %v89_v13  ;;  %v79_v26 = vld [vmem:[#allocation2 + $0x118] sm:$0xff]  ;;  %v94_v27 = vld [vmem:[#allocation2 + $0x190] sm:$0xff]  ;;  %v72_v28 = vld [vmem:[#allocation2 + $0xe0] sm:$0xff] }
   0xf   :  { %178 = vmatpush.msra.mxu3 %v91_v14  ;;  %155 = vmatpush.msra.mxu2 %v102_v19  ;;  %v73_v29 = vld [vmem:[#allocation2 + $0xe8] sm:$0xff]  ;;  %v75_v30 = vld [vmem:[#allocation2 + $0xf8] sm:$0xff]  ;;  %v90_v31 = vld [vmem:[#allocation2 + $0x170] sm:$0xff] }
  0x10   :  { %119 = vmatpush.msra.mxu0 %v84_v15  ;;  %139 = vmatpush.msra.mxu1 %v85_v16  ;;  %v68_v32 = vld [vmem:[#allocation2 + $0xc0] sm:$0xff]  ;;  %v69_v33 = vld [vmem:[#allocation2 + $0xc8] sm:$0xff]  ;;  %v71_v34 = vld [vmem:[#allocation2 + $0xd8] sm:$0xff] }
  0x11   :  { %179 = vmatpush.msra.mxu3 %v87_v18  ;;  %156 = vmatpush.msra.mxu2 %v98_v23  ;;  %v86_v35 = vld [vmem:[#allocation2 + $0x150] sm:$0xff]  ;;  %v64_v36 = vld [vmem:[#allocation2 + $0xa0] sm:$0xff]  ;;  %v65_v37 = vld [vmem:[#allocation2 + $0xa8] sm:$0xff] }
  0x12   :  { %120 = vmatpush.msra.mxu0 %v80_v20  ;;  %140 = vmatpush.msra.mxu1 %v81_v21  ;;  %v67_v38 = vld [vmem:[#allocation2 + $0xb8] sm:$0xff]  ;;  %v82_v39 = vld [vmem:[#allocation2 + $0x130] sm:$0xff]  ;;  %v60_v40 = vld [vmem:[#allocation2 + $0x80] sm:$0xff] }
  0x13   :  { %180 = vmatpush.msra.mxu3 %v83_v22  ;;  %157 = vmatpush.msra.mxu2 %v94_v27  ;;  %v61_v41 = vld [vmem:[#allocation2 + $0x88] sm:$0xff]  ;;  %v63_v42 = vld [vmem:[#allocation2 + $0x98] sm:$0xff]  ;;  %v78_v43 = vld [vmem:[#allocation2 + $0x110] sm:$0xff] }
  0x14   :  { %121 = vmatpush.msra.mxu0 %v76_v24  ;;  %141 = vmatpush.msra.mxu1 %v77_v25  ;;  %v56_v44 = vld [vmem:[#allocation2 + $0x60] sm:$0xff]  ;;  %v57_v45 = vld [vmem:[#allocation2 + $0x68] sm:$0xff]  ;;  %v59_v46 = vld [vmem:[#allocation2 + $0x78] sm:$0xff] }
  0x15   :  { %181 = vmatpush.msra.mxu3 %v79_v26  ;;  %158 = vmatpush.msra.mxu2 %v90_v31  ;;  %v74_v47 = vld [vmem:[#allocation2 + $0xf0] sm:$0xff]  ;;  %v52_v48 = vld [vmem:[#allocation2 + $0x40] sm:$0xff]  ;;  %v53_v49 = vld [vmem:[#allocation2 + $0x48] sm:$0xff] }
  0x16   :  { %122 = vmatpush.msra.mxu0 %v72_v28  ;;  %142 = vmatpush.msra.mxu1 %v73_v29  ;;  %v55_v50 = vld [vmem:[#allocation2 + $0x58] sm:$0xff]  ;;  %v70_v51 = vld [vmem:[#allocation2 + $0xd0] sm:$0xff]  ;;  %v48_v52 = vld [vmem:[#allocation2 + $0x20] sm:$0xff] }
  0x17   :  { %182 = vmatpush.msra.mxu3 %v75_v30  ;;  %159 = vmatpush.msra.mxu2 %v86_v35  ;;  %v49_v53 = vld [vmem:[#allocation2 + $0x28] sm:$0xff]  ;;  %v51_v54 = vld [vmem:[#allocation2 + $0x38] sm:$0xff]  ;;  %v66_v55 = vld [vmem:[#allocation2 + $0xb0] sm:$0xff] }
  0x18   :  { %123 = vmatpush.msra.mxu0 %v68_v32  ;;  %143 = vmatpush.msra.mxu1 %v69_v33  ;;  %v44_v56 = vld [vmem:[#allocation2] sm:$0xff]  ;;  %v45_v57 = vld [vmem:[#allocation2 + $0x8] sm:$0xff]  ;;  %v47_v58 = vld [vmem:[#allocation2 + $0x18] sm:$0xff] }
  0x19   :  { %183 = vmatpush.msra.mxu3 %v71_v34  ;;  %160 = vmatpush.msra.mxu2 %v82_v39  ;;  %v40_v59 = vld [vmem:[%s395_s2] sm:$0xff]  ;;  %v62_v60 = vld [vmem:[#allocation2 + $0x90] sm:$0xff]  ;;  %v111_v2 = vld [vmem:[%s393_s0 + $0x8] sm:$0xff] }
  0x1a   :  { %124 = vmatpush.msra.mxu0 %v64_v36  ;;  %144 = vmatpush.msra.mxu1 %v65_v37  ;;  %v58_v61 = vld [vmem:[#allocation2 + $0x70] sm:$0xff]  ;;  %v110_v1 = vld [vmem:[%s393_s0] sm:$0xff]  ;;  %v113_v9 = vld [vmem:[%s393_s0 + $0x18] sm:$0xff] }
  0x1b   :  { %184 = vmatpush.msra.mxu3 %v67_v38  ;;  %161 = vmatpush.msra.mxu2 %v78_v43  ;;  %v54_v62 = vld [vmem:[#allocation2 + $0x50] sm:$0xff] }
  0x1c   :  { %125 = vmatpush.msra.mxu0 %v60_v40  ;;  %145 = vmatpush.msra.mxu1 %v61_v41  ;;  %v50_v63 = vld [vmem:[#allocation2 + $0x30] sm:$0xff]  ;;  %v42_v41 = vld [vmem:[%s396_s3] sm:$0xff] }
  0x1d   :  { %185 = vmatpush.msra.mxu3 %v63_v42  ;;  %162 = vmatpush.msra.mxu2 %v74_v47  ;;  %v46_v0 = vld [vmem:[#allocation2 + $0x10] sm:$0xff] }
  0x1e   :  { %126 = vmatpush.msra.mxu0 %v56_v44  ;;  %146 = vmatpush.msra.mxu1 %v57_v45  ;;  %v112_v17 = vld [vmem:[%s393_s0 + $0x10] sm:$0xff] }
  0x1f   :  { %186 = vmatpush.msra.mxu3 %v59_v46  ;;  %163 = vmatpush.msra.mxu2 %v70_v51 }
  0x20   :  { %127 = vmatpush.msra.mxu0 %v52_v48  ;;  %147 = vmatpush.msra.mxu1 %v53_v49 }
  0x21   :  { %187 = vmatpush.msra.mxu3 %v55_v50  ;;  %164 = vmatpush.msra.mxu2 %v66_v55 }
  0x22   :  { %128 = vmatpush.msra.mxu0 %v48_v52  ;;  %148 = vmatpush.msra.mxu1 %v49_v53 }
  0x23   :  { %188 = vmatpush.msra.mxu3 %v51_v54  ;;  %165 = vmatpush.msra.mxu2 %v62_v60 }
  0x24   :  { %129 = vmatpush.msra.mxu0 %v44_v56  ;;  %149 = vmatpush.msra.mxu1 %v45_v57 }
  0x25   :  { %189 = vmatpush.msra.mxu3 %v47_v58  ;;  %130 = vmatmul.f32.vlgmr.msra.gmra.mxu0 %v40_v59 }
  0x26   :  { %150 = vmatmul.f32.vlgmr.msra.gmra.mxu1 %v40_v59  ;;  %190 = vmatmul.f32.vlgmr.msra.gmra.mxu3 %v40_v59 }
  0x27   :  { %166 = vmatpush.msra.mxu2 %v58_v61 }
  0x29   :  { %167 = vmatpush.msra.mxu2 %v54_v62 }
  0x2b   :  { %168 = vmatpush.msra.mxu2 %v50_v63 }
  0x2d   :  { %169 = vmatpush.msra.mxu2 %v46_v0 }
  0x2e   :  { %170 = vmatmul.f32.vlgmr.msra.gmra.mxu2 %v40_v59 }
  0xa2   :  { %v131_v3 = vpop.f32.mrf.mxu0 }
  0xa3   :  { %v194_v4 = vadd.f32 %v131_v3, %v110_v1  ;;  %v151_v5 = vpop.f32.mrf.mxu1 }
  0xa4   :  { %v195_v6 = vadd.f32 %v151_v5, %v111_v2 }
  0xa5   :  { %v277_v7 = vmul.f32 -1.442695, %v194_v4 }
  0xa6   :  { %v278_v8 = vmul.f32 -1.442695, %v195_v6 }
  0xa7   :  { %283 = vpow2.f32 %v277_v7 }
  0xa8   :  { %285 = vpow2.f32 %v278_v8 }
  0xa9   :  { %v191_v10 = vpop.f32.mrf.mxu3 }
  0xaa   :  { %v197_v11 = vadd.f32 %v191_v10, %v113_v9 }
  0xac   :  { %v279_v12 = vmul.f32 -1.442695, %v197_v11 }
  0xad   :  { %v284_v13 = vpop.eup %283 }
  0xae   :  { %v286_v14 = vpop.eup %285  ;;  %v201_v15 = vadd.f32 1.0, %v284_v13  ;;  %287 = vpow2.f32 %v279_v12 }
  0xaf   :  { %v220_v16 = vadd.f32 1.0, %v286_v14 }
  0xb0   :  { %289 = vrcp.f32 %v201_v15  ;;  %v213_v28 = vand.u32 2147483648, %v201_v15  ;;  %v211_v31 = vand.u32 2147483647, %v201_v15  ;;  %vm207_vm2 = vweird.f32 %v201_v15 }
  0xb1   :  { %291 = vrcp.f32 %v220_v16  ;;  %v171_v18 = vpop.f32.mrf.mxu2  ;;  %v232_v29 = vand.u32 2147483648, %v220_v16  ;;  %v230_v33 = vand.u32 2147483647, %v220_v16  ;;  %vm226_vm3 = vweird.f32 %v220_v16 }
  0xb2   :  { %v196_v20 = vadd.f32 %v171_v18, %v112_v17  ;;  %v214_v38 = vor.u32 1.1754944e-38, %v213_v28  ;;  %vm212_vm6 = vcmp.eq.f32.partialorder %v211_v31, 8.507059e+37 }
  0xb3   :  { %v233_v40 = vor.u32 1.1754944e-38, %v232_v29  ;;  %vm231_vm7 = vcmp.eq.f32.partialorder %v230_v33, 8.507059e+37 }
  0xb4   :  { %v288_v19 = vpop.eup %287 }
  0xb5   :  { %v240_v21 = vadd.f32 1.0, %v288_v19 }
  0xb6   :  { %v290_v22 = vpop.eup %289 }
  0xb7   :  { %v292_v23 = vpop.eup %291  ;;  %v203_v24 = vmul.f32 %v290_v22, %v201_v15  ;;  %293 = vrcp.f32 %v240_v21  ;;  %vm208_vm0 = vweird.f32 %v290_v22  ;;  %v252_v52 = vand.u32 2147483648, %v240_v21 }
  0xb8   :  { %v222_v25 = vmul.f32 %v292_v23, %v220_v16  ;;  %295 = vtanh.f32 %v196_v20  ;;  %vm227_vm1 = vweird.f32 %v292_v23  ;;  %vm209_vm4 = vmor %vm207_vm2, %vm208_vm0  ;;  %vm246_vm9 = vweird.f32 %v240_v21 }
  0xb9   :  { %v204_v26 = vsub.f32 1.0, %v203_v24  ;;  %vm228_vm5 = vmor %vm226_vm3, %vm227_vm1  ;;  %v250_v53 = vand.u32 2147483647, %v240_v21  ;;  %v253_v55 = vor.u32 1.1754944e-38, %v252_v52 }
  0xba   :  { %v223_v27 = vsub.f32 1.0, %v222_v25 }
  0xbb   :  { %v205_v30 = vmul.f32 %v290_v22, %v204_v26  ;;  %vm251_vm11 = vcmp.eq.f32.partialorder %v250_v53, 8.507059e+37 }
  0xbc   :  { %v224_v32 = vmul.f32 %v292_v23, %v223_v27 }
  0xbd   :  { %v294_v34 = vpop.eup %293  ;;  %v206_v35 = vadd.f32 %v290_v22, %v205_v30 }
  0xbe   :  { %v296_v36 = vpop.eup %295  ;;  %v242_v37 = vmul.f32 %v294_v34, %v240_v21  ;;  %v225_v39 = vadd.f32 %v292_v23, %v224_v32  ;;  %vm247_vm8 = vweird.f32 %v294_v34 }
  0xbf   :  { %v210_v42 = vsel %vm209_vm4, %v290_v22, %v206_v35  ;;  %vm248_vm10 = vmor %vm246_vm9, %vm247_vm8 }
  0xc0   :  { %v243_v43 = vsub.f32 1.0, %v242_v37  ;;  %v215_v44 = vsel %vm212_vm6, %v214_v38, %v210_v42  ;;  %v229_v45 = vsel %vm228_vm5, %v292_v23, %v225_v39 }
  0xc1   :  { %v234_v46 = vsel %vm231_vm7, %v233_v40, %v229_v45  ;;  %v257_v47 = vmul.f32 %v296_v36, %v215_v44 }
  0xc2   :  { %v244_v48 = vmul.f32 %v294_v34, %v243_v43  ;;  %v256_v49 = vmul.f32 %v234_v46, %v42_v41 }
  0xc4   :  { %v258_v50 = vadd.f32 %v257_v47, %v256_v49  ;;  %v245_v51 = vadd.f32 %v294_v34, %v244_v48 }
  0xc6   :  { %297 = vtanh.f32 %v258_v50  ;;  %263 = vst [vmem:[%s399_s6] sm:$0xff] %v258_v50  ;;  %v249_v54 = vsel %vm248_vm10, %v294_v34, %v245_v51 }
  0xc7   :  { %v254_v57 = vsel %vm251_vm11, %v253_v55, %v249_v54 }
  0xcc   :  { %v298_v56 = vpop.eup %297 }
  0xcd   :  { %v260_v58 = vmul.f32 %v298_v56, %v254_v57 }
  0xcf   :  { %261 = vst [vmem:[%s397_s4] sm:$0xff] %v260_v58 }
  0xd0   :  { %262 = vst [vmem:[%s398_s5] sm:$0xff] %v260_v58 }
  0xd1   :  { %276 = vsyncpa [#allocation3], 1 }

</bundles_post_ra>
